<compile_context>
chip_gen: v6e
topology: v6e:2x2x1
jax: 0.10.0
libtpu: 0.0.40
codegen_flags: <defaults>
</compile_context>

<pallas_src>
import jax
import jax.numpy as jnp
from jax.experimental import pallas as pl
from jax.experimental.pallas import tpu as pltpu

_MAX_LANE = 1024          # preferred lane-dense last dim (large multiple of 128 -> unmasked vst)
_MIN_LANE = 128           # minimum lane-dense last dim
_SMALL_ELEMS = 128 * 1024 # <= this many elements: single gridless call (whole arrays in VMEM)


def _tensor_to_kernel(x_ref, y_ref, xo_ref, yo_ref):
    # x path: scale by 10 in x's dtype, truncate-cast to int32 (torch .to(int)), add 1.
    x = x_ref[...]
    xo_ref[...] = (x * jnp.asarray(10, x.dtype)).astype(jnp.int32) + 1

    # y path: scale by 13 in y's own dtype, cast to x's dtype (== yo dtype), subtract 2.
    # TODO(synk): Mosaic may carry the bf16 multiply at f32 precision (fusing away the
    # intermediate bf16 rounding), so y_out can differ from torch by ~1 bf16 ulp.
    y = y_ref[...]
    y13 = y * jnp.asarray(13, y.dtype)
    yo_ref[...] = y13.astype(yo_ref.dtype) - jnp.asarray(2, yo_ref.dtype)


def _hw_tile_params():
    """Per-generation tiling: (base_block_rows_at_lane_1024, vmem_limit_bytes)."""
    try:
        vmem = pltpu.get_tpu_info().vmem_capacity_bytes
    except Exception:
        vmem = 64 * 1024 * 1024  # conservative (v7x-sized) default
    if vmem <= 64 * 1024 * 1024:
        # v7x: only 64 MiB VMEM per TensorCore -> keep tiles lean, tighter scoped cap.
        return 512, 32 * 1024 * 1024
    # v5e / v6e: 128 MiB physical VMEM -> bigger blocks, fewer grid steps.
    return 1024, 48 * 1024 * 1024


def _pick_lane(total):
    for lane in (1024, 512, 256, 128):
        if total % lane == 0:
            return lane
    return None


def _run_elementwise_2d(x2d, y2d, out_x_dtype, out_y_dtype):
    """Run the fused kernel on lane-dense 2D views (rows, lane)."""
    rows, lane = x2d.shape
    total = rows * lane
    out_shape = (
        jax.ShapeDtypeStruct((rows, lane), out_x_dtype),
        jax.ShapeDtypeStruct((rows, lane), out_y_dtype),
    )

    if total <= _SMALL_ELEMS:
        # Tiny case: single gridless call, whole arrays resident in VMEM.
        return pl.pallas_call(_tensor_to_kernel, out_shape=out_shape)(x2d, y2d)

    base_rows, vmem_limit = _hw_tile_params()
    # Keep ~constant bytes per block regardless of lane width.
    block_rows = max(8, (base_rows * _MAX_LANE) // lane)
    # Guarantee >= 2 blocks so the "parallel" grid axis can shard across v7x's 2 TCs.
    half = -(-rows // 2)            # cdiv(rows, 2)
    half = -(-half // 8) * 8        # round up to multiple of 8 (sublane rule)
    block_rows = min(block_rows, max(8, half))

    grid = (pl.cdiv(rows, block_rows),)
    spec = pl.BlockSpec((block_rows, lane), lambda i: (i, 0))

    bytes_accessed = (
        total * x2d.dtype.itemsize
        + total * y2d.dtype.itemsize
        + total * jnp.dtype(out_x_dtype).itemsize
        + total * jnp.dtype(out_y_dtype).itemsize
    )

    return pl.pallas_call(
        _tensor_to_kernel,
        out_shape=out_shape,
        grid=grid,
        in_specs=[spec, spec],
        out_specs=(spec, spec),
        compiler_params=pltpu.CompilerParams(
            dimension_semantics=("parallel",),  # shards blocks over v7x's two TCs
            vmem_limit_bytes=vmem_limit,
        ),
        cost_estimate=pl.CostEstimate(
            flops=4 * total, transcendentals=0, bytes_accessed=bytes_accessed),
    )(x2d, y2d)


def tensor_to_forward(x, y):
    """x: float tensor; y: any float dtype, same shape.
    Returns (int32 x_out, x.dtype y_out) matching Model.forward.
    # TODO(synk): torch's .to(device='cpu') / memory_format / copy=True have no TPU/JAX
    # meaning (pure layout/device directives) — treated as no-ops.
    """
    assert x.shape == y.shape
    shape = x.shape
    total = x.size

    lane = _pick_lane(total)
    if lane is not None:
        # Aligned fast path: zero-copy lane-dense 2D view, no pad/slice HBM traffic.
        x2d = x.reshape(total // lane, lane)
        y2d = y.reshape(total // lane, lane)
        xo2d, yo2d = _run_elementwise_2d(x2d, y2d, jnp.int32, x.dtype)
        return xo2d.reshape(shape), yo2d.reshape(shape)

    # Ragged fallback (total not a multiple of 128): process the aligned bulk zero-copy,
    # pad only the tiny (<128-element) tail row.
    xf = x.reshape(-1)
    yf = y.reshape(-1)
    bulk = (total // _MIN_LANE) * _MIN_LANE
    rem = total - bulk

    xo_parts, yo_parts = [], []
    if bulk:
        xo_b, yo_b = _run_elementwise_2d(
            xf[:bulk].reshape(-1, _MIN_LANE),
            yf[:bulk].reshape(-1, _MIN_LANE),
            jnp.int32, x.dtype)
        xo_parts.append(xo_b.reshape(-1))
        yo_parts.append(yo_b.reshape(-1))
    if rem:
        pad = _MIN_LANE - rem
        xt = jnp.pad(xf[bulk:], (0, pad)).reshape(1, _MIN_LANE)
        yt = jnp.pad(yf[bulk:], (0, pad)).reshape(1, _MIN_LANE)
        xo_t, yo_t = _run_elementwise_2d(xt, yt, jnp.int32, x.dtype)
        xo_parts.append(xo_t.reshape(-1)[:rem])
        yo_parts.append(yo_t.reshape(-1)[:rem])

    xo = xo_parts[0] if len(xo_parts) == 1 else jnp.concatenate(xo_parts)
    yo = yo_parts[0] if len(yo_parts) == 1 else jnp.concatenate(yo_parts)
    return xo.reshape(shape), yo.reshape(shape)


if __name__ == "__main__":
    key = jax.random.PRNGKey(0)
    kx, ky = jax.random.split(key)

    # Small shapes consistent with an elementwise forward pass (2048 elems -> aligned path).
    x = jax.random.uniform(kx, (2, 4, 16, 16), dtype=jnp.float32)
    y = jax.random.uniform(ky, (2, 4, 16, 16), dtype=jnp.float32).astype(jnp.bfloat16)

    x_out, y_out = tensor_to_forward(x, y)
    jax.block_until_ready((x_out, y_out))

    # Plain-JAX reference mirroring the PyTorch semantics.
    x_ref = (x * 10.0).astype(jnp.int32) + 1
    y_ref = (y * jnp.asarray(13, y.dtype)).astype(x.dtype) - jnp.asarray(2, x.dtype)

    assert x_out.dtype == jnp.int32
    assert y_out.dtype == x.dtype
    assert x_out.shape == x.shape and y_out.shape == y.shape
    assert jnp.array_equal(x_out, x_ref)
    # bf16 arithmetic may be carried out at f32 precision inside the TPU kernel, so allow
    # ~1 bf16 ulp of slack instead of demanding bit-exactness.
    assert jnp.allclose(y_out.astype(jnp.float32), y_ref.astype(jnp.float32),
                        rtol=2e-2, atol=1e-1)

    # Exercise the ragged fallback once (210 elems, not a multiple of 128).
    xr = jax.random.uniform(kx, (2, 3, 5, 7), dtype=jnp.float32)
    yr = jax.random.uniform(ky, (2, 3, 5, 7), dtype=jnp.float32).astype(jnp.bfloat16)
    xro, yro = tensor_to_forward(xr, yr)
    jax.block_until_ready((xro, yro))
    xr_ref = (xr * 10.0).astype(jnp.int32) + 1
    yr_ref = (yr * jnp.asarray(13, yr.dtype)).astype(xr.dtype) - jnp.asarray(2, xr.dtype)
    assert jnp.array_equal(xro, xr_ref)
    assert jnp.allclose(yro.astype(jnp.float32), yr_ref.astype(jnp.float32),
                        rtol=2e-2, atol=1e-1)

    print("KERNEL_OK")
</pallas_src>

<mosaic_0001>
module attributes {stable_mosaic.version = 11 : i64} {
  func.func @_tensor_to_kernel(%arg0: memref<2x1024xf32, #tpu.memory_space<vmem>>, %arg1: memref<2x1024xbf16, #tpu.memory_space<vmem>>, %arg2: memref<2x1024xi32, #tpu.memory_space<vmem>>, %arg3: memref<2x1024xf32, #tpu.memory_space<vmem>>) attributes {dimension_semantics = [], scalar_prefetch = 0 : i64, scratch_operands = 0 : i64, tpu.core_type = #tpu.core_type<tc>} {
    %c0 = arith.constant 0 : index
    %c0_0 = arith.constant 0 : index
    %0 = vector.load %arg0[%c0, %c0_0] : memref<2x1024xf32, #tpu.memory_space<vmem>>, vector<2x1024xf32>
    %cst = arith.constant 1.000000e+01 : f32
    %1 = vector.broadcast %cst : f32 to vector<2x1024xf32>
    %2 = arith.mulf %0, %1 : vector<2x1024xf32>
    %3 = arith.fptosi %2 : vector<2x1024xf32> to vector<2x1024xi32>
    %c1_i32 = arith.constant 1 : i32
    %4 = vector.broadcast %c1_i32 : i32 to vector<2x1024xi32>
    %5 = arith.addi %3, %4 : vector<2x1024xi32>
    %c0_1 = arith.constant 0 : index
    %c0_2 = arith.constant 0 : index
    %6 = vector.load %arg2[%c0_1, %c0_2] : memref<2x1024xi32, #tpu.memory_space<vmem>>, vector<2x1024xi32>
    tpu.vector_store %arg2[%c0_1, %c0_2], %5 {strides = array<i32>} : memref<2x1024xi32, #tpu.memory_space<vmem>>, vector<2x1024xi32>,
    %c0_3 = arith.constant 0 : index
    %c0_4 = arith.constant 0 : index
    %7 = vector.load %arg1[%c0_3, %c0_4] : memref<2x1024xbf16, #tpu.memory_space<vmem>>, vector<2x1024xbf16>
    %cst_5 = arith.constant 1.300000e+01 : bf16
    %8 = vector.broadcast %cst_5 : bf16 to vector<2x1024xbf16>
    %9 = arith.mulf %7, %8 : vector<2x1024xbf16>
    %10 = arith.extf %9 : vector<2x1024xbf16> to vector<2x1024xf32>
    %cst_6 = arith.constant 2.000000e+00 : f32
    %11 = vector.broadcast %cst_6 : f32 to vector<2x1024xf32>
    %12 = arith.subf %10, %11 : vector<2x1024xf32>
    %c0_7 = arith.constant 0 : index
    %c0_8 = arith.constant 0 : index
    %13 = vector.load %arg3[%c0_7, %c0_8] : memref<2x1024xf32, #tpu.memory_space<vmem>>, vector<2x1024xf32>
    tpu.vector_store %arg3[%c0_7, %c0_8], %12 {strides = array<i32>} : memref<2x1024xf32, #tpu.memory_space<vmem>>, vector<2x1024xf32>,
    return
  }
}

</mosaic_0001>

<bundles_post_ra>
// kernel: tpu_custom_call.1
= control target key start
LH: loop header
LB: loop body
LE: loop exit
PB: predicated region body
PF: predicated region fallthrough
CT: control target
= control target key end

     0   :  { %9 = vsyncpa [#allocation3], 0  ;;  %s222_s0 = inlined_call_operand.hbm [shape: f32[2,1024], index: 0, kind: input, shape index: {}]   ;;  %s223_s1 = inlined_call_operand.hbm [shape: bf16[2,1024], index: 1, kind: input, shape index: {}]   ;;  %s224_s2 = inlined_call_operand.hbm [shape: s32[2,1024], index: 2, kind: output, shape index: {0}]   ;;  %s225_s3 = inlined_call_operand.hbm [shape: f32[2,1024], index: 3, kind: output, shape index: {1}]  }
   0x1   :  { %10 = vsyncpa [#allocation6], 0 }
   0x2   :  { %11 = vsyncpa [#allocation4], 0 }
   0x3   :  { %12 = vsyncpa [#allocation9], 0  ;;  %s186_s12 = smov [#allocation2]   ;;  %s187_s14 = smov [#allocation5]  }
   0x4   :  { %s19_s13 = sshll.u32 %s186_s12, 4  ;;  %s29_s15 = sshll.u32 %s187_s14, 4  ;;  %s20_s13 = int_to_ptr.vmem [resolvable:$true] %s19_s13  ;;  %s30_s15 = int_to_ptr.vmem [resolvable:$true] %s29_s15 }
   0x5   :  { %s106_s16 = scalar_lea.vmem %s20_s13, 256  ;;  %p111_p1 = scmp.lt.s32.totalorder %s20_s13, %s20_s13 }
   0x6   :  { %p107_p0 = scmp.ne.s32.totalorder %s20_s13, %s106_s16  ;;  %p112_p2 = scmp.lt.s32.totalorder %s106_s16, %s106_s16 }
   0x8   :  { %p113_p3 = por %p112_p2, %p111_p1 }
   0xa   :  { %p114_p4 = pnand %p113_p3, %p107_p0 }
   0xc   :  { %117 = shalt.err (!%p114_p4)
}
   0xd   :  { %22 = dma.hbm_to_vmem [thread:$0]  %s222_s0, 256, %s20_s13, [#allocation3]  }
   0xe   :  { %s126_s19 = scalar_lea.vmem %s30_s15, 128  ;;  %p131_p6 = scmp.lt.s32.totalorder %s30_s15, %s30_s15 }
   0xf   :  { %p127_p5 = scmp.ne.s32.totalorder %s30_s15, %s126_s19  ;;  %p132_p7 = scmp.lt.s32.totalorder %s126_s19, %s126_s19 }
  0x11   :  { %p133_p8 = por %p132_p7, %p131_p6 }
  0x13   :  { %p134_p9 = pnand %p133_p8, %p127_p5 }
  0x15   :  { %137 = shalt.err (!%p134_p9)
}
  0x16   :  { %32 = dma.hbm_to_vmem [thread:$0]  %s223_s1, 128, %s30_s15, [#allocation6]  }
  0x17   :  { %178 = dma.done.wait [#allocation3], 256  }
  0x18   :  { %179 = vsyncadd [#allocation3], 4294967040 }
  0x19   :  { %180 = dma.done.wait [#allocation6], 128  }
  0x1a   :  { %181 = vsyncadd [#allocation6], 4294967168  ;;  %v40_v0 = vld [vmem:[#allocation2] sm:$0xff]  ;;  %v41_v1 = vld [vmem:[#allocation2 + $0x8] sm:$0xff]  ;;  %s188_s0 = smov [#allocation8]   ;;  %s189_s23 = smov [#allocation7]  }
  0x1b   :  { %v50_v2 = vld [vmem:[#allocation5] sm:$0xff]  ;;  %v42_v3 = vmul.f32 10.0, %v40_v0  ;;  %v43_v4 = vmul.f32 10.0, %v41_v1  ;;  %s74_s22 = sshll.u32 %s188_s0, 4  ;;  %s64_s24 = sshll.u32 %s189_s23, 4  ;;  %s75_s22 = int_to_ptr.vmem [resolvable:$true] %s74_s22  ;;  %s65_s24 = int_to_ptr.vmem [resolvable:$true] %s64_s24 }
  0x1c   :  { %v51_v5 = vmul.bf16 1095778640, %v50_v2  ;;  %s138_s1 = scalar_lea.vmem %s75_s22, 256  ;;  %p143_p11 = scmp.lt.s32.totalorder %s75_s22, %s75_s22 }
  0x1d   :  { %v90_v6 = vtrunc.f32 %v42_v3  ;;  %v92_v7 = vtrunc.f32 %v43_v4  ;;  %p139_p10 = scmp.ne.s32.totalorder %s75_s22, %s138_s1  ;;  %p144_p12 = scmp.lt.s32.totalorder %s138_s1, %s138_s1 }
  0x1e   :  { %v52_v8 = vunpack.c.l.bf16 %v51_v5  ;;  %v53_v9 = vunpack.c.h.bf16 %v51_v5 }
  0x1f   :  { %v91_v10 = vcvt.f32.s32 %v90_v6  ;;  %v93_v11 = vcvt.f32.s32 %v92_v7  ;;  %p145_p13 = por %p144_p12, %p143_p11 }
  0x20   :  { %v88_v12 = vadd.f32 -2.0, %v52_v8  ;;  %v89_v13 = vadd.f32 -2.0, %v53_v9 }
  0x21   :  { %v46_v14 = vadd.s32 1, %v91_v10  ;;  %v47_v15 = vadd.s32 1, %v93_v11  ;;  %p146_p0 = pnand %p145_p13, %p139_p10 }
  0x22   :  { %56 = vst [vmem:[#allocation8] sm:$0xff] %v88_v12  ;;  %57 = vst [vmem:[#allocation8 + $0x8] sm:$0xff] %v89_v13 }
  0x23   :  { %149 = shalt.err (!%p146_p0)
}
  0x24   :  { %77 = dma.vmem_to_hbm [thread:$0]  %s75_s22, 256, %s225_s3, [#allocation9]   ;;  %48 = vst [vmem:[#allocation7] sm:$0xff] %v46_v14  ;;  %49 = vst [vmem:[#allocation7 + $0x8] sm:$0xff] %v47_v15 }
  0x25   :  { %s158_s27 = scalar_lea.vmem %s65_s24, 256  ;;  %p163_p2 = scmp.lt.s32.totalorder %s65_s24, %s65_s24 }
  0x26   :  { %p159_p1 = scmp.ne.s32.totalorder %s65_s24, %s158_s27  ;;  %p164_p3 = scmp.lt.s32.totalorder %s158_s27, %s158_s27 }
  0x28   :  { %p165_p4 = por %p164_p3, %p163_p2 }
  0x2a   :  { %p166_p5 = pnand %p165_p4, %p159_p1 }
  0x2c   :  { %169 = shalt.err (!%p166_p5)
}
  0x2d   :  { %67 = dma.vmem_to_hbm [thread:$0]  %s65_s24, 256, %s224_s2, [#allocation4]  }
  0x2e   :  { %182 = dma.done.wait [#allocation4], 256  }
  0x2f   :  { %183 = vsyncadd [#allocation4], 4294967040 }
  0x30   :  { %184 = dma.done.wait [#allocation9], 256  }
  0x31   :  { %185 = vsyncadd [#allocation9], 4294967040 }
  0x32   :  { %84 = vsyncpa [#allocation3], 1 }
  0x33   :  { %85 = vsyncpa [#allocation6], 1 }
  0x34   :  { %86 = vsyncpa [#allocation4], 1 }
  0x35   :  { %87 = vsyncpa [#allocation9], 1 }

</bundles_post_ra>
